<compile_context>
chip_gen: v6e
topology: v6e:2x2x1
jax: 0.10.0
libtpu: 0.0.40
codegen_flags: <defaults>
</compile_context>

<pallas_src>
import jax
import jax.numpy as jnp
from jax.experimental import pallas as pl
from jax.experimental.pallas import tpu as pltpu

IN_DIM = 54
HID = 128
OUT_DIM = 50


def _mlp_kernel(x_ref, w1_ref, b1_ref, w2_ref, b2_ref, w3_ref, b3_ref, o_ref):
    # Whole hot path (3 matmuls + biases + ReLUs) runs on MXU/VPU out of VMEM.
    cdt = w1_ref.dtype  # MXU operand dtype (bf16 default, f32 for validation)

    x = x_ref[...].astype(cdt)
    h = jnp.dot(x, w1_ref[...], preferred_element_type=jnp.float32) + b1_ref[...]
    h = jnp.maximum(h, 0.0).astype(cdt)

    h = jnp.dot(h, w2_ref[...], preferred_element_type=jnp.float32) + b2_ref[...]
    h = jnp.maximum(h, 0.0).astype(cdt)

    y = jnp.dot(h, w3_ref[...], preferred_element_type=jnp.float32) + b3_ref[...]
    o_ref[...] = y.astype(o_ref.dtype)  # (tile_b, 50) block, masked vst is fine


def _choose_tile_b(B, cap=2048):
    """HBM-stream bound kernel: use the biggest tile that fits comfortably in
    VMEM (cap=2048 keeps well under even v5e's 16 MiB scoped limit).  For very
    large batches keep >= 8 grid steps (256-row granules) so v7x's two
    TensorCores both get work; on single-TC v5e/v6e this never reduces the
    tile below the cap in a way that matters."""
    if B <= cap:
        t = B
    else:
        t = min(cap, ((pl.cdiv(B, 8) + 255) // 256) * 256)
    t = max(t, 16)
    return ((t + 15) // 16) * 16  # multiple of 16: full bf16 vreg sublanes


def prepare_params(params, *, compute_dtype=jnp.bfloat16):
    """One-time weight prep (hoisted out of the forward call): weights in the
    MXU compute dtype, biases in f32 (added to the f32 accumulator)."""
    return {
        "w1": params["w1"].astype(compute_dtype),   # (54, 128)
        "b1": params["b1"].astype(jnp.float32),     # (1, 128)
        "w2": params["w2"].astype(compute_dtype),   # (128, 128)
        "b2": params["b2"].astype(jnp.float32),     # (1, 128)
        "w3": params["w3"].astype(compute_dtype),   # (128, 50)
        "b3": params["b3"].astype(jnp.float32),     # (1, 50)
    }


def curve_predictor_forward(x, prepared, *, tile_b=None):
    """x: (B, 54) f32 (or bf16 from the producer). prepared: prepare_params(...)."""
    B, F = x.shape
    assert F == IN_DIM

    if tile_b is None:
        tile_b = _choose_tile_b(B)
    grid = (pl.cdiv(B, tile_b),)  # partial last block is masked by Pallas

    resident = dict(pipeline_mode=pl.Buffered(1))  # fetch weights/biases once

    return pl.pallas_call(
        _mlp_kernel,
        out_shape=jax.ShapeDtypeStruct((B, OUT_DIM), jnp.float32),
        grid_spec=pltpu.PrefetchScalarGridSpec(
            num_scalar_prefetch=0,
            grid=grid,
            in_specs=[
                pl.BlockSpec((tile_b, IN_DIM), lambda i: (i, 0)),          # x (streams)
                pl.BlockSpec((IN_DIM, HID), lambda i: (0, 0), **resident),  # w1
                pl.BlockSpec((1, HID), lambda i: (0, 0), **resident),       # b1
                pl.BlockSpec((HID, HID), lambda i: (0, 0), **resident),     # w2
                pl.BlockSpec((1, HID), lambda i: (0, 0), **resident),       # b2
                pl.BlockSpec((HID, OUT_DIM), lambda i: (0, 0), **resident), # w3
                pl.BlockSpec((1, OUT_DIM), lambda i: (0, 0), **resident),   # b3
            ],
            out_specs=pl.BlockSpec((tile_b, OUT_DIM), lambda i: (i, 0)),
        ),
        compiler_params=pltpu.CompilerParams(
            dimension_semantics=("parallel",),
        ),
    )(x, prepared["w1"], prepared["b1"], prepared["w2"], prepared["b2"],
      prepared["w3"], prepared["b3"])


def init_params(key):
    """Deterministic synthetic init, PyTorch-Linear-like uniform(-1/sqrt(fan_in), +)."""
    ks = jax.random.split(key, 6)

    def lin(kw, kb, fan_in, fan_out):
        bound = 1.0 / jnp.sqrt(fan_in)
        # PyTorch stores weight as (out, in); we keep the transposed (in, out) layout.
        w = jax.random.uniform(kw, (fan_in, fan_out), jnp.float32, -bound, bound)
        b = jax.random.uniform(kb, (1, fan_out), jnp.float32, -bound, bound)
        return w, b

    w1, b1 = lin(ks[0], ks[1], IN_DIM, HID)
    w2, b2 = lin(ks[2], ks[3], HID, HID)
    w3, b3 = lin(ks[4], ks[5], HID, OUT_DIM)
    return {"w1": w1, "b1": b1, "w2": w2, "b2": b2, "w3": w3, "b3": b3}


def _reference(x, p):
    h = jnp.maximum(x @ p["w1"] + p["b1"], 0.0)
    h = jnp.maximum(h @ p["w2"] + p["b2"], 0.0)
    return h @ p["w3"] + p["b3"]


if __name__ == "__main__":
    key = jax.random.PRNGKey(0)
    kx, kp = jax.random.split(key)
    params = init_params(kp)

    # Small, odd batch to exercise the partial-tile path (no wrapper padding).
    batch = 13
    x = jax.random.normal(kx, (batch, IN_DIM), jnp.float32)
    y_ref = _reference(x, params)

    # Exact f32 validation path — tight tolerance.
    p_f32 = prepare_params(params, compute_dtype=jnp.float32)
    y_f32 = jax.block_until_ready(curve_predictor_forward(x, p_f32))
    assert y_f32.shape == (batch, OUT_DIM)
    assert jnp.allclose(y_f32, y_ref, atol=1e-4, rtol=1e-4)

    # Default bf16-matmul path (recommended on v5e/v6e/v7x) — relaxed tolerance.
    p_bf16 = prepare_params(params)  # hoisted one-time weight prep
    y_bf16 = jax.block_until_ready(curve_predictor_forward(x, p_bf16))
    assert y_bf16.shape == (batch, OUT_DIM)
    assert jnp.allclose(y_bf16, y_ref, atol=5e-2, rtol=5e-2)

    print("KERNEL_OK")
</pallas_src>

<mosaic_0001>
module attributes {stable_mosaic.version = 11 : i64} {
  func.func @_mlp_kernel(%arg0: i32, %arg1: memref<16x54xf32, #tpu.memory_space<vmem>>, %arg2: memref<54x128xf32, #tpu.memory_space<vmem>>, %arg3: memref<1x128xf32, #tpu.memory_space<vmem>>, %arg4: memref<128x128xf32, #tpu.memory_space<vmem>>, %arg5: memref<1x128xf32, #tpu.memory_space<vmem>>, %arg6: memref<128x50xf32, #tpu.memory_space<vmem>>, %arg7: memref<1x50xf32, #tpu.memory_space<vmem>>, %arg8: memref<16x50xf32, #tpu.memory_space<vmem>>) attributes {dimension_semantics = [#tpu.dimension_semantics<parallel>], iteration_bounds = array<i64: 1>, scalar_prefetch = 0 : i64, scratch_operands = 0 : i64, tpu.core_type = #tpu.core_type<tc>, window_params = [{transform_indices = @transform_0, window_bounds = array<i64: 16, 54>}, {pipeline_mode = #tpu.pipeline_mode<synchronous>, transform_indices = @transform_1, window_bounds = array<i64: 54, 128>}, {pipeline_mode = #tpu.pipeline_mode<synchronous>, transform_indices = @transform_2, window_bounds = array<i64: 1, 128>}, {pipeline_mode = #tpu.pipeline_mode<synchronous>, transform_indices = @transform_3, window_bounds = array<i64: 128, 128>}, {pipeline_mode = #tpu.pipeline_mode<synchronous>, transform_indices = @transform_4, window_bounds = array<i64: 1, 128>}, {pipeline_mode = #tpu.pipeline_mode<synchronous>, transform_indices = @transform_5, window_bounds = array<i64: 128, 50>}, {pipeline_mode = #tpu.pipeline_mode<synchronous>, transform_indices = @transform_6, window_bounds = array<i64: 1, 50>}, {transform_indices = @transform_7, window_bounds = array<i64: 16, 50>}]} {
    %c0 = arith.constant 0 : index
    %c0_0 = arith.constant 0 : index
    %0 = vector.load %arg1[%c0, %c0_0] : memref<16x54xf32, #tpu.memory_space<vmem>>, vector<16x54xf32>
    %c0_1 = arith.constant 0 : index
    %c0_2 = arith.constant 0 : index
    %1 = vector.load %arg2[%c0_1, %c0_2] : memref<54x128xf32, #tpu.memory_space<vmem>>, vector<54x128xf32>
    %cst = arith.constant dense<0.000000e+00> : vector<16x128xf32>
    %2 = tpu.matmul %0, %1, %cst {dimension_numbers = #tpu.dot_dimension_numbers<[1], [0], [0], [1], [0, 0, 1, 1], [], []>} : vector<16x54xf32>, vector<54x128xf32>, vector<16x128xf32> -> vector<16x128xf32>
    %c0_3 = arith.constant 0 : index
    %c0_4 = arith.constant 0 : index
    %3 = vector.load %arg3[%c0_3, %c0_4] : memref<1x128xf32, #tpu.memory_space<vmem>>, vector<1x128xf32>
    %4 = vector.broadcast %3 : vector<1x128xf32> to vector<16x128xf32>
    %5 = arith.addf %2, %4 : vector<16x128xf32>
    %cst_5 = arith.constant 0.000000e+00 : f32
    %6 = vector.broadcast %cst_5 : f32 to vector<16x128xf32>
    %7 = arith.maximumf %5, %6 : vector<16x128xf32>
    %c0_6 = arith.constant 0 : index
    %c0_7 = arith.constant 0 : index
    %8 = vector.load %arg4[%c0_6, %c0_7] : memref<128x128xf32, #tpu.memory_space<vmem>>, vector<128x128xf32>
    %cst_8 = arith.constant dense<0.000000e+00> : vector<16x128xf32>
    %9 = tpu.matmul %7, %8, %cst_8 {dimension_numbers = #tpu.dot_dimension_numbers<[1], [0], [0], [1], [0, 0, 1, 1], [], []>} : vector<16x128xf32>, vector<128x128xf32>, vector<16x128xf32> -> vector<16x128xf32>
    %c0_9 = arith.constant 0 : index
    %c0_10 = arith.constant 0 : index
    %10 = vector.load %arg5[%c0_9, %c0_10] : memref<1x128xf32, #tpu.memory_space<vmem>>, vector<1x128xf32>
    %11 = vector.broadcast %10 : vector<1x128xf32> to vector<16x128xf32>
    %12 = arith.addf %9, %11 : vector<16x128xf32>
    %cst_11 = arith.constant 0.000000e+00 : f32
    %13 = vector.broadcast %cst_11 : f32 to vector<16x128xf32>
    %14 = arith.maximumf %12, %13 : vector<16x128xf32>
    %c0_12 = arith.constant 0 : index
    %c0_13 = arith.constant 0 : index
    %15 = vector.load %arg6[%c0_12, %c0_13] : memref<128x50xf32, #tpu.memory_space<vmem>>, vector<128x50xf32>
    %cst_14 = arith.constant dense<0.000000e+00> : vector<16x50xf32>
    %16 = tpu.matmul %14, %15, %cst_14 {dimension_numbers = #tpu.dot_dimension_numbers<[1], [0], [0], [1], [0, 0, 1, 1], [], []>} : vector<16x128xf32>, vector<128x50xf32>, vector<16x50xf32> -> vector<16x50xf32>
    %c0_15 = arith.constant 0 : index
    %c0_16 = arith.constant 0 : index
    %17 = vector.load %arg7[%c0_15, %c0_16] : memref<1x50xf32, #tpu.memory_space<vmem>>, vector<1x50xf32>
    %18 = vector.broadcast %17 : vector<1x50xf32> to vector<16x50xf32>
    %19 = arith.addf %16, %18 : vector<16x50xf32>
    %c0_17 = arith.constant 0 : index
    %c0_18 = arith.constant 0 : index
    %20 = vector.load %arg8[%c0_17, %c0_18] : memref<16x50xf32, #tpu.memory_space<vmem>>, vector<16x50xf32>
    tpu.vector_store %arg8[%c0_17, %c0_18], %19 {strides = array<i32>} : memref<16x50xf32, #tpu.memory_space<vmem>>, vector<16x50xf32>,
    return
  }
  func.func @transform_0(%arg0: i32) -> (i32, i32) {
    %c0_i32 = arith.constant 0 : i32
    %c0_i32_0 = arith.constant 0 : i32
    return %arg0, %c0_i32 : i32, i32
  }
  func.func @transform_1(%arg0: i32) -> (i32, i32) {
    %c0_i32 = arith.constant 0 : i32
    %c0_i32_0 = arith.constant 0 : i32
    %c0_i32_1 = arith.constant 0 : i32
    return %c0_i32, %c0_i32_0 : i32, i32
  }
  func.func @transform_2(%arg0: i32) -> (i32, i32) {
    %c0_i32 = arith.constant 0 : i32
    %c0_i32_0 = arith.constant 0 : i32
    %c0_i32_1 = arith.constant 0 : i32
    return %c0_i32, %c0_i32_0 : i32, i32
  }
  func.func @transform_3(%arg0: i32) -> (i32, i32) {
    %c0_i32 = arith.constant 0 : i32
    %c0_i32_0 = arith.constant 0 : i32
    %c0_i32_1 = arith.constant 0 : i32
    return %c0_i32, %c0_i32_0 : i32, i32
  }
  func.func @transform_4(%arg0: i32) -> (i32, i32) {
    %c0_i32 = arith.constant 0 : i32
    %c0_i32_0 = arith.constant 0 : i32
    %c0_i32_1 = arith.constant 0 : i32
    return %c0_i32, %c0_i32_0 : i32, i32
  }
  func.func @transform_5(%arg0: i32) -> (i32, i32) {
    %c0_i32 = arith.constant 0 : i32
    %c0_i32_0 = arith.constant 0 : i32
    %c0_i32_1 = arith.constant 0 : i32
    return %c0_i32, %c0_i32_0 : i32, i32
  }
  func.func @transform_6(%arg0: i32) -> (i32, i32) {
    %c0_i32 = arith.constant 0 : i32
    %c0_i32_0 = arith.constant 0 : i32
    %c0_i32_1 = arith.constant 0 : i32
    return %c0_i32, %c0_i32_0 : i32, i32
  }
  func.func @transform_7(%arg0: i32) -> (i32, i32) {
    %c0_i32 = arith.constant 0 : i32
    %c0_i32_0 = arith.constant 0 : i32
    return %arg0, %c0_i32 : i32, i32
  }
}

</mosaic_0001>

<bundles_post_ra>
// kernel: tpu_custom_call.1
= control target key start
LH: loop header
LB: loop body
LE: loop exit
PB: predicated region body
PF: predicated region fallthrough
CT: control target
= control target key end

     0   :  { %12 = vsyncpa [#allocation3], 0  ;;  %s733_s0 = inlined_call_operand.hbm [shape: f32[13,54], index: 0, kind: input, shape index: {}]   ;;  %s734_s1 = inlined_call_operand.vmem [shape: f32[54,128], index: 1, kind: input, shape index: {}]   ;;  %s735_s2 = inlined_call_operand.vmem [shape: f32[1,128], index: 2, kind: input, shape index: {}]   ;;  %s736_s3 = inlined_call_operand.vmem [shape: f32[128,128], index: 3, kind: input, shape index: {}]   ;;  %s737_s4 = inlined_call_operand.vmem [shape: f32[1,128], index: 4, kind: input, shape index: {}]   ;;  %s738_s5 = inlined_call_operand.vmem [shape: f32[128,50], index: 5, kind: input, shape index: {}]   ;;  %s739_s6 = inlined_call_operand.vmem [shape: f32[1,50], index: 6, kind: input, shape index: {}]   ;;  %s740_s7 = inlined_call_operand.hbm [shape: f32[13,50], index: 7, kind: output, shape index: {}]  }
   0x1   :  { %13 = vsyncpa [#allocation4], 0  ;;  %s549_s24 = smov [#allocation2]  }
   0x2   :  { %s19_s25 = sshll.u32 %s549_s24, 4  ;;  %s20_s25 = int_to_ptr.vmem [resolvable:$true] %s19_s25 }
   0x3   :  { %s513_s26 = scalar_lea.vmem %s20_s25, 256  ;;  %p518_p1 = scmp.lt.s32.totalorder %s20_s25, %s20_s25 }
   0x4   :  { %p514_p0 = scmp.ne.s32.totalorder %s20_s25, %s513_s26  ;;  %p519_p2 = scmp.lt.s32.totalorder %s513_s26, %s513_s26 }
   0x6   :  { %p520_p3 = por %p519_p2, %p518_p1 }
   0x8   :  { %p521_p4 = pnand %p520_p3, %p514_p0 }
   0xa   :  { %524 = shalt.err (!%p521_p4)
}
   0xb   :  { %s550_s27 = smov 128   ;;  %s551_s28 = smov 8  }
   0xc   :  { %25 = dma.hbm_to_vmem [thread:$0]  %s733_s0, 256, %s20_s25, [#allocation3], %s550_s27, %s550_s27, %s551_s28  }
   0xd   :  { %545 = dma.done.wait [#allocation3], 256  }
   0xe   :  { %546 = vsyncadd [#allocation3], 4294967040  ;;  %vm64_vm0 = vcmask 1045504   ;;  %v49_v0 = vld [vmem:[%s734_s1 + $0x30] sm:$0x3f]  ;;  %v48_v1 = vld [vmem:[%s734_s1 + $0x28] sm:$0xff] }
   0xf   :  { %vm57_vm1 = vcmask 441344   ;;  %414 = vmatprep.subr.msk.mxu0 %vm64_vm0, %v49_v0  ;;  %v47_v2 = vld [vmem:[%s734_s1 + $0x20] sm:$0xff]  ;;  %v160_v4 = vld [vmem:[%s736_s3 + $0x78] sm:$0xff]  ;;  %v159_v5 = vld [vmem:[%s736_s3 + $0x70] sm:$0xff]  ;;  %vm343_vm2 = vcmask 408576  }
  0x10   :  { %415 = vmatpush3.msk.msra.mxu0 %vm64_vm0, %v49_v0  ;;  %v41_v3 = vld [vmem:[#allocation2] sm:$0xff]  ;;  %v46_v6 = vld [vmem:[%s734_s1 + $0x18] sm:$0xff]  ;;  %431 = vmatprep.subr.mxu1 %v160_v4  ;;  %v158_v7 = vld [vmem:[%s736_s3 + $0x68] sm:$0xff] }
  0x11   :  { %416 = vmatprep.subr.mxu0 %v48_v1  ;;  %428 = vmatprep.mubr.msk.f32.mxu0 %vm57_vm1, %v41_v3  ;;  %v45_v8 = vld [vmem:[%s734_s1 + $0x10] sm:$0xff]  ;;  %v157_v9 = vld [vmem:[%s736_s3 + $0x60] sm:$0xff]  ;;  %v44_v10 = vld [vmem:[%s734_s1 + $0x8] sm:$0xff] }
  0x12   :  { %417 = vmatpush3.msra.mxu0 %v48_v1  ;;  %432 = vmatpush3.msra.mxu1 %v160_v4  ;;  %v156_v11 = vld [vmem:[%s736_s3 + $0x58] sm:$0xff]  ;;  %v43_v12 = vld [vmem:[%s734_s1] sm:$0xff]  ;;  %v155_v13 = vld [vmem:[%s736_s3 + $0x50] sm:$0xff] }
  0x13   :  { %418 = vmatprep.subr.mxu0 %v47_v2  ;;  %433 = vmatprep.subr.mxu1 %v159_v5  ;;  %v42_v14 = vld [vmem:[#allocation2 + $0x8] sm:$0xff]  ;;  %v153_v16 = vld [vmem:[%s736_s3 + $0x40] sm:$0xff]  ;;  %v152_v17 = vld [vmem:[%s736_s3 + $0x38] sm:$0xff] }
  0x14   :  { %419 = vmatpush3.msra.mxu0 %v47_v2  ;;  %434 = vmatpush3.msra.mxu1 %v159_v5  ;;  %v154_v15 = vld [vmem:[%s736_s3 + $0x48] sm:$0xff]  ;;  %v151_v18 = vld [vmem:[%s736_s3 + $0x30] sm:$0xff]  ;;  %v149_v20 = vld [vmem:[%s736_s3 + $0x20] sm:$0xff] }
  0x15   :  { %420 = vmatprep.subr.mxu0 %v46_v6  ;;  %435 = vmatprep.subr.mxu1 %v158_v7  ;;  %v150_v19 = vld [vmem:[%s736_s3 + $0x28] sm:$0xff]  ;;  %v148_v21 = vld [vmem:[%s736_s3 + $0x18] sm:$0xff]  ;;  %v147_v22 = vld [vmem:[%s736_s3 + $0x10] sm:$0xff] }
  0x16   :  { %421 = vmatpush3.msra.mxu0 %v46_v6  ;;  %436 = vmatpush3.msra.mxu1 %v158_v7  ;;  %v146_v23 = vld [vmem:[%s736_s3 + $0x8] sm:$0xff]  ;;  %v145_v24 = vld [vmem:[%s736_s3] sm:$0xff]  ;;  %v260_v25 = vld [vmem:[%s738_s5 + $0x78] sm:$0xff] }
  0x17   :  { %422 = vmatprep.subr.mxu0 %v45_v8  ;;  %437 = vmatprep.subr.mxu1 %v157_v9  ;;  %v259_v26 = vld [vmem:[%s738_s5 + $0x70] sm:$0xff]  ;;  %v258_v27 = vld [vmem:[%s738_s5 + $0x68] sm:$0xff]  ;;  %v257_v28 = vld [vmem:[%s738_s5 + $0x60] sm:$0xff] }
  0x18   :  { %423 = vmatpush3.msra.mxu0 %v45_v8  ;;  %438 = vmatpush3.msra.mxu1 %v157_v9  ;;  %v256_v29 = vld [vmem:[%s738_s5 + $0x58] sm:$0xff]  ;;  %v255_v30 = vld [vmem:[%s738_s5 + $0x50] sm:$0xff]  ;;  %v254_v31 = vld [vmem:[%s738_s5 + $0x48] sm:$0xff] }
  0x19   :  { %424 = vmatprep.subr.mxu0 %v44_v10  ;;  %439 = vmatprep.subr.mxu1 %v156_v11  ;;  %v253_v32 = vld [vmem:[%s738_s5 + $0x40] sm:$0xff]  ;;  %v252_v33 = vld [vmem:[%s738_s5 + $0x38] sm:$0xff]  ;;  %v251_v34 = vld [vmem:[%s738_s5 + $0x30] sm:$0xff] }
  0x1a   :  { %425 = vmatpush3.msra.mxu0 %v44_v10  ;;  %440 = vmatpush3.msra.mxu1 %v156_v11  ;;  %v250_v35 = vld [vmem:[%s738_s5 + $0x28] sm:$0xff]  ;;  %v249_v36 = vld [vmem:[%s738_s5 + $0x20] sm:$0xff]  ;;  %v248_v44 = vld [vmem:[%s738_s5 + $0x18] sm:$0xff] }
  0x1b   :  { %426 = vmatprep.subr.mxu0 %v43_v12  ;;  %441 = vmatprep.subr.mxu1 %v155_v13  ;;  %v363_v37 = vld [vmem:[%s735_s2] ss:$0 sm:$0xff]  ;;  %v247_v45 = vld [vmem:[%s738_s5 + $0x10] sm:$0xff]  ;;  %v246_v46 = vld [vmem:[%s738_s5 + $0x8] sm:$0xff] }
  0x1c   :  { %427 = vmatpush3.msra.mxu0 %v43_v12  ;;  %442 = vmatpush3.msra.mxu1 %v155_v13  ;;  %v245_v47 = vld [vmem:[%s738_s5] sm:$0xff]  ;;  %s552_s5 = smov [#allocation5]  }
  0x1d   :  { %429 = vmatmul.mubr.msk.f32.vlgmr.msra.gmra.mxu0 %vm57_vm1, %v42_v14  ;;  %443 = vmatprep.subr.mxu1 %v154_v15  ;;  %v367_v48 = vld [vmem:[%s737_s4] ss:$0 sm:$0xff]  ;;  %s351_s19 = sshll.u32 %s552_s5, 4  ;;  %s352_s19 = int_to_ptr.vmem [resolvable:$true] %s351_s19 }
  0x1e   :  { %444 = vmatpush3.msra.mxu1 %v154_v15  ;;  %466 = vmatprep.subr.mxu0 %v260_v25  ;;  %v368_v55 = vld [vmem:[%s739_s6] ss:$0 sm:$0xff]  ;;  %s525_s4 = scalar_lea.vmem %s352_s19, 256  ;;  %p530_p6 = scmp.lt.s32.totalorder %s352_s19, %s352_s19 }
  0x1f   :  { %445 = vmatprep.subr.mxu1 %v153_v16  ;;  %467 = vmatpush3.msra.mxu0 %v260_v25  ;;  %p526_p5 = scmp.ne.s32.totalorder %s352_s19, %s525_s4  ;;  %p531_p7 = scmp.lt.s32.totalorder %s525_s4, %s525_s4 }
  0x20   :  { %446 = vmatpush3.msra.mxu1 %v153_v16  ;;  %468 = vmatprep.subr.mxu0 %v259_v26 }
  0x21   :  { %447 = vmatprep.subr.mxu1 %v152_v17  ;;  %469 = vmatpush3.msra.mxu0 %v259_v26  ;;  %p532_p8 = por %p531_p7, %p530_p6 }
  0x22   :  { %448 = vmatpush3.msra.mxu1 %v152_v17  ;;  %470 = vmatprep.subr.mxu0 %v258_v27 }
  0x23   :  { %449 = vmatprep.subr.mxu1 %v151_v18  ;;  %471 = vmatpush3.msra.mxu0 %v258_v27  ;;  %p533_p9 = pnand %p532_p8, %p526_p5 }
  0x24   :  { %450 = vmatpush3.msra.mxu1 %v151_v18  ;;  %472 = vmatprep.subr.mxu0 %v257_v28 }
  0x25   :  { %451 = vmatprep.subr.mxu1 %v150_v19  ;;  %473 = vmatpush3.msra.mxu0 %v257_v28 }
  0x26   :  { %452 = vmatpush3.msra.mxu1 %v150_v19  ;;  %474 = vmatprep.subr.mxu0 %v256_v29 }
  0x27   :  { %453 = vmatprep.subr.mxu1 %v149_v20  ;;  %475 = vmatpush3.msra.mxu0 %v256_v29 }
  0x28   :  { %454 = vmatpush3.msra.mxu1 %v149_v20  ;;  %476 = vmatprep.subr.mxu0 %v255_v30 }
  0x29   :  { %455 = vmatprep.subr.mxu1 %v148_v21  ;;  %477 = vmatpush3.msra.mxu0 %v255_v30 }
  0x2a   :  { %456 = vmatpush3.msra.mxu1 %v148_v21  ;;  %478 = vmatprep.subr.mxu0 %v254_v31 }
  0x2b   :  { %457 = vmatprep.subr.mxu1 %v147_v22  ;;  %479 = vmatpush3.msra.mxu0 %v254_v31 }
  0x2c   :  { %458 = vmatpush3.msra.mxu1 %v147_v22  ;;  %480 = vmatprep.subr.mxu0 %v253_v32 }
  0x2d   :  { %459 = vmatprep.subr.mxu1 %v146_v23  ;;  %481 = vmatpush3.msra.mxu0 %v253_v32 }
  0x2e   :  { %460 = vmatpush3.msra.mxu1 %v146_v23  ;;  %482 = vmatprep.subr.mxu0 %v252_v33 }
  0x2f   :  { %461 = vmatprep.subr.mxu1 %v145_v24  ;;  %483 = vmatpush3.msra.mxu0 %v252_v33 }
  0x30   :  { %462 = vmatpush3.msra.mxu1 %v145_v24  ;;  %484 = vmatprep.subr.mxu0 %v251_v34 }
  0x31   :  { %485 = vmatpush3.msra.mxu0 %v251_v34 }
  0x32   :  { %486 = vmatprep.subr.mxu0 %v250_v35 }
  0x33   :  { %487 = vmatpush3.msra.mxu0 %v250_v35 }
  0x34   :  { %488 = vmatprep.subr.mxu0 %v249_v36 }
  0x35   :  { %489 = vmatpush3.msra.mxu0 %v249_v36 }
  0x36   :  { %490 = vmatprep.subr.mxu0 %v248_v44 }
  0x37   :  { %491 = vmatpush3.msra.mxu0 %v248_v44 }
  0x38   :  { %492 = vmatprep.subr.mxu0 %v247_v45 }
  0x39   :  { %493 = vmatpush3.msra.mxu0 %v247_v45 }
  0x3a   :  { %494 = vmatprep.subr.mxu0 %v246_v46 }
  0x3b   :  { %495 = vmatpush3.msra.mxu0 %v246_v46 }
  0x3c   :  { %496 = vmatprep.subr.mxu0 %v245_v47 }
  0x3d   :  { %497 = vmatpush3.msra.mxu0 %v245_v47 }
  0xdd   :  { %v430_v38 = vpop.f32.mrf.mxu0 }
  0xde   :  { %v140_v39 = vadd.f32 %v430_v38, %v363_v37 }
  0xdf   :  { %v134_v40 = vpop.f32.mrf.mxu0 }
  0xe0   :  { %v135_v41 = vadd.f32 %v363_v37, %v134_v40  ;;  %v144_v43 = vmax.f32 %v140_v39, 0.0 }
  0xe2   :  { %v143_v42 = vmax.f32 %v135_v41, 0.0 }
  0xe4   :  { %463 = vmatprep.mubr.f32.mxu1 %v143_v42 }
  0xe5   :  { %464 = vmatmul.mubr.f32.vlgmr.msra.gmra.mxu1 %v144_v43 }
 0x1a5   :  { %v465_v49 = vpop.f32.mrf.mxu1 }
 0x1a6   :  { %v240_v50 = vadd.f32 %v465_v49, %v367_v48 }
 0x1a7   :  { %v234_v51 = vpop.f32.mrf.mxu1 }
 0x1a8   :  { %v235_v52 = vadd.f32 %v367_v48, %v234_v51  ;;  %v244_v54 = vmax.f32 %v240_v50, 0.0 }
 0x1aa   :  { %v243_v53 = vmax.f32 %v235_v52, 0.0 }
 0x1ac   :  { %498 = vmatprep.mubr.f32.mxu0 %v243_v53 }
 0x1ad   :  { %499 = vmatmul.mubr.f32.vlgmr.msra.gmra.mxu0 %v244_v54 }
 0x26d   :  { %v500_v56 = vpop.f32.mrf.mxu0 }
 0x26e   :  { %v340_v57 = vadd.f32 %v500_v56, %v368_v55 }
 0x26f   :  { %v334_v58 = vpop.f32.mrf.mxu0 }
 0x270   :  { %v335_v59 = vadd.f32 %v368_v55, %v334_v58  ;;  %345 = vst.msk [vmem:[#allocation5 + $0x8] sm:$0xff] %vm343_vm2, %v340_v57 }
 0x272   :  { %344 = vst.msk [vmem:[#allocation5] sm:$0xff] %vm343_vm2, %v335_v59 }
 0x273   :  { %536 = shalt.err (!%p533_p9)
}
 0x274   :  { %357 = dma.vmem_to_hbm [thread:$0]  %s352_s19, 256, %s740_s7, [#allocation4], %s550_s27, %s550_s27, %s551_s28  }
 0x275   :  { %547 = dma.done.wait [#allocation4], 256  }
 0x276   :  { %548 = vsyncadd [#allocation4], 4294967040 }
 0x277   :  { %361 = vsyncpa [#allocation3], 1 }
 0x278   :  { %362 = vsyncpa [#allocation4], 1 }

</bundles_post_ra>
